<compile_context>
chip_gen: v7x
topology: tpu7x:2x2x1
jax: 0.10.0
libtpu: 0.0.40
codegen_flags: <defaults>
</compile_context>

<pallas_src>
import functools

import jax
import jax.numpy as jnp
from jax.experimental import pallas as pl
from jax.experimental.pallas import tpu as pltpu


NEG_SLOPE = 0.2  # config['neg_slope']


def _fused_attacker_kernel(x_ref, y_ref,
                           w1_ref, b1_ref, w2_ref, b2_ref, w3_ref, b3_ref,
                           loss_ref, *, neg_slope):
    """One grid step = one attacker network (0: biased, 1: filtered).

    x_ref:    (1, B, D)   embeddings of this network
    y_ref:    (B, 1)      binary labels (shared by both networks)
    w1_ref:   (1, D, H1)  b1_ref: (1, 1, H1)
    w2_ref:   (1, H1, H2) b2_ref: (1, 1, H2)
    w3_ref:   (1, 1, H2)  final linear stored as a row (out_dim == 1)
    b3_ref:   (1, 1, 1)
    loss_ref: (1, 1, 1)   scalar BCE loss of this network
    """
    x = x_ref[0]                         # (B, D)
    y = y_ref[...]                       # (B, 1)

    # Hoist bias / final-row reads once.
    b1 = b1_ref[0]                       # (1, H1)
    b2 = b2_ref[0]                       # (1, H2)
    w3_row = w3_ref[0]                   # (1, H2)
    b3 = b3_ref[0]                       # (1, 1)

    # Linear 1 + LeakyReLU  (MXU)
    h = jnp.dot(x, w1_ref[0], preferred_element_type=jnp.float32) + b1
    h = jnp.where(h >= 0.0, h, neg_slope * h)

    # Linear 2 + LeakyReLU  (MXU)
    h = jnp.dot(h, w2_ref[0], preferred_element_type=jnp.float32) + b2
    h = jnp.where(h >= 0.0, h, neg_slope * h)

    # Linear 3 (out_dim = 1): VPU multiply + lane reduction (no padded MXU matmul).
    s = jnp.sum(h * w3_row, axis=-1, keepdims=True) + b3     # (B, 1) pre-sigmoid scores

    # BCE(sigmoid(s), y) computed from the scores via log-sigmoid:
    #   log p     = -softplus(-s) = min(s, 0)  - log(1 + exp(-|s|))
    #   log (1-p) = -softplus( s) = min(-s, 0) - log(1 + exp(-|s|))
    # clamped at -100 for torch.nn.BCELoss parity.
    softplus_tail = jnp.log(1.0 + jnp.exp(-jnp.abs(s)))
    log_p = jnp.maximum(jnp.minimum(s, 0.0) - softplus_tail, -100.0)
    log_1mp = jnp.maximum(jnp.minimum(-s, 0.0) - softplus_tail, -100.0)
    per_example = -(y * log_p + (1.0 - y) * log_1mp)         # (B, 1)

    inv_b = 1.0 / per_example.shape[0]
    loss = jnp.sum(per_example, axis=0, keepdims=True) * inv_b   # (1, 1)
    loss_ref[0] = loss


def _fused_attacker_losses(x_stacked, labels, params_stacked, *, neg_slope):
    """Runs both attacker networks in a single pallas_call; returns (2, 1, 1) losses."""
    _, B, D = x_stacked.shape
    w1, b1, w2, b2, w3_row, b3 = params_stacked
    H1 = w1.shape[-1]
    H2 = w2.shape[-1]

    kernel = functools.partial(_fused_attacker_kernel, neg_slope=neg_slope)

    def net_block(shape):
        # Per-network block: leading axis selects {biased, filtered}.
        return pl.BlockSpec((1,) + shape, lambda n: (n, 0, 0))

    losses = pl.pallas_call(
        kernel,
        out_shape=jax.ShapeDtypeStruct((2, 1, 1), jnp.float32),
        grid_spec=pltpu.PrefetchScalarGridSpec(
            num_scalar_prefetch=0,
            grid=(2,),
            in_specs=[
                net_block((B, D)),                         # x (stacked embeddings)
                pl.BlockSpec((B, 1), lambda n: (0, 0)),    # labels (shared)
                net_block((D, H1)),                        # w1
                net_block((1, H1)),                        # b1
                net_block((H1, H2)),                       # w2
                net_block((1, H2)),                        # b2
                net_block((1, H2)),                        # w3 (row layout)
                net_block((1, 1)),                         # b3
            ],
            out_specs=net_block((1, 1)),                   # per-network scalar loss
        ),
        compiler_params=pltpu.CompilerParams(
            dimension_semantics=("parallel",)),            # v7x: one network per TensorCore
    )(x_stacked, labels, w1, b1, w2, b2, w3_row, b3)
    return losses


def bmmf_binary_forward(biased_embedding, filtered_embedding, labels,
                        biased_params, filtered_params, *, neg_slope=NEG_SLOPE):
    """Mirrors BMMF_binary.forward: returns (biased_loss, filtered_loss)."""
    B, _ = biased_embedding.shape
    labels = labels.astype(jnp.float32).reshape(B, 1)

    # Stack the two networks along a leading axis of size 2 (biased=0, filtered=1).
    x = jnp.stack([biased_embedding, filtered_embedding]).astype(jnp.float32)
    stacked = [jnp.stack([bp, fp]).astype(jnp.float32)
               for bp, fp in zip(biased_params, filtered_params)]
    w1, b1, w2, b2, w3, b3 = stacked
    w3_row = jnp.swapaxes(w3, -1, -2)        # (2, H2, 1) -> (2, 1, H2) row layout

    losses = _fused_attacker_losses(x, labels, (w1, b1, w2, b2, w3_row, b3),
                                    neg_slope=neg_slope)
    return losses[0, 0, 0], losses[1, 0, 0]


def init_mlp3_params(key, embed_dim, out_dim=1, std=0.01):
    """Deterministic init matching BMMF_binary.init_weights (normal, std=0.01).

    Weights stored as (in, out) — transposed relative to torch nn.Linear.
    """
    h1 = embed_dim // 2
    h2 = embed_dim // 4
    ks = jax.random.split(key, 6)
    w1 = std * jax.random.normal(ks[0], (embed_dim, h1), jnp.float32)
    b1 = std * jax.random.normal(ks[1], (1, h1), jnp.float32)
    w2 = std * jax.random.normal(ks[2], (h1, h2), jnp.float32)
    b2 = std * jax.random.normal(ks[3], (1, h2), jnp.float32)
    w3 = std * jax.random.normal(ks[4], (h2, out_dim), jnp.float32)
    b3 = std * jax.random.normal(ks[5], (1, out_dim), jnp.float32)
    return (w1, b1, w2, b2, w3, b3)


if __name__ == "__main__":
    key = jax.random.PRNGKey(0)
    k_be, k_fe, k_lab, k_bp, k_fp = jax.random.split(key, 5)

    B = 8            # batch of user embeddings
    EMBED_DIM = 128  # self.embed_dim (feature dim of loaded modality features)

    biased_embedding = jax.random.normal(k_be, (B, EMBED_DIM), jnp.float32)
    filtered_embedding = jax.random.normal(k_fe, (B, EMBED_DIM), jnp.float32)
    labels = jax.random.bernoulli(k_lab, 0.5, (B,)).astype(jnp.float32)

    biased_params = init_mlp3_params(k_bp, EMBED_DIM)
    filtered_params = init_mlp3_params(k_fp, EMBED_DIM)

    biased_loss, filtered_loss = jax.jit(bmmf_binary_forward)(
        biased_embedding, filtered_embedding, labels,
        biased_params, filtered_params)
    jax.block_until_ready((biased_loss, filtered_loss))

    # Pure-JAX reference mirroring torch: sigmoid -> BCELoss (log terms clamped at -100).
    def ref_net(x, params):
        w1, b1, w2, b2, w3, b3 = params
        h = x @ w1 + b1
        h = jnp.where(h >= 0, h, NEG_SLOPE * h)
        h = h @ w2 + b2
        h = jnp.where(h >= 0, h, NEG_SLOPE * h)
        return jax.nn.sigmoid(h @ w3 + b3)

    def ref_bce(p, y):
        p = p.squeeze()
        return jnp.mean(-(y * jnp.maximum(jnp.log(p), -100.0)
                          + (1 - y) * jnp.maximum(jnp.log(1 - p), -100.0)))

    ref_b = ref_bce(ref_net(biased_embedding, biased_params), labels)
    ref_f = ref_bce(ref_net(filtered_embedding, filtered_params), labels)
    assert jnp.allclose(biased_loss, ref_b, atol=1e-5), (biased_loss, ref_b)
    assert jnp.allclose(filtered_loss, ref_f, atol=1e-5), (filtered_loss, ref_f)

    print("KERNEL_OK")
</pallas_src>

<mosaic_0001>
module attributes {stable_mosaic.version = 11 : i64} {
  func.func @_fused_attacker_kernel(%arg0: i32, %arg1: memref<1x8x128xf32, #tpu.memory_space<vmem>>, %arg2: memref<8x1xf32, #tpu.memory_space<vmem>>, %arg3: memref<1x128x64xf32, #tpu.memory_space<vmem>>, %arg4: memref<1x1x64xf32, #tpu.memory_space<vmem>>, %arg5: memref<1x64x32xf32, #tpu.memory_space<vmem>>, %arg6: memref<1x1x32xf32, #tpu.memory_space<vmem>>, %arg7: memref<1x1x32xf32, #tpu.memory_space<vmem>>, %arg8: memref<1x1x1xf32, #tpu.memory_space<vmem>>, %arg9: memref<1x1x1xf32, #tpu.memory_space<vmem>>) attributes {dimension_semantics = [#tpu.dimension_semantics<parallel>], iteration_bounds = array<i64: 2>, scalar_prefetch = 0 : i64, scratch_operands = 0 : i64, tpu.core_type = #tpu.core_type<tc>, window_params = [{transform_indices = @transform_0, window_bounds = array<i64: 1, 8, 128>}, {pipeline_mode = #tpu.pipeline_mode<synchronous>, transform_indices = @transform_1, window_bounds = array<i64: 8, 1>}, {transform_indices = @transform_2, window_bounds = array<i64: 1, 128, 64>}, {transform_indices = @transform_3, window_bounds = array<i64: 1, 1, 64>}, {transform_indices = @transform_4, window_bounds = array<i64: 1, 64, 32>}, {transform_indices = @transform_5, window_bounds = array<i64: 1, 1, 32>}, {transform_indices = @transform_6, window_bounds = array<i64: 1, 1, 32>}, {transform_indices = @transform_7, window_bounds = array<i64: 1, 1, 1>}, {transform_indices = @transform_8, window_bounds = array<i64: 1, 1, 1>}]} {
    %c0 = arith.constant 0 : index
    %c0_0 = arith.constant 0 : index
    %c0_1 = arith.constant 0 : index
    %0 = vector.load %arg1[%c0, %c0_0, %c0_1] : memref<1x8x128xf32, #tpu.memory_space<vmem>>, vector<1x8x128xf32>
    %1 = vector.shape_cast %0 : vector<1x8x128xf32> to vector<8x128xf32>
    %c0_2 = arith.constant 0 : index
    %c0_3 = arith.constant 0 : index
    %2 = vector.load %arg2[%c0_2, %c0_3] : memref<8x1xf32, #tpu.memory_space<vmem>>, vector<8x1xf32>
    %c0_4 = arith.constant 0 : index
    %c0_5 = arith.constant 0 : index
    %c0_6 = arith.constant 0 : index
    %3 = vector.load %arg4[%c0_4, %c0_5, %c0_6] : memref<1x1x64xf32, #tpu.memory_space<vmem>>, vector<1x1x64xf32>
    %4 = vector.shape_cast %3 : vector<1x1x64xf32> to vector<1x64xf32>
    %c0_7 = arith.constant 0 : index
    %c0_8 = arith.constant 0 : index
    %c0_9 = arith.constant 0 : index
    %5 = vector.load %arg6[%c0_7, %c0_8, %c0_9] : memref<1x1x32xf32, #tpu.memory_space<vmem>>, vector<1x1x32xf32>
    %6 = vector.shape_cast %5 : vector<1x1x32xf32> to vector<1x32xf32>
    %c0_10 = arith.constant 0 : index
    %c0_11 = arith.constant 0 : index
    %c0_12 = arith.constant 0 : index
    %7 = vector.load %arg7[%c0_10, %c0_11, %c0_12] : memref<1x1x32xf32, #tpu.memory_space<vmem>>, vector<1x1x32xf32>
    %8 = vector.shape_cast %7 : vector<1x1x32xf32> to vector<1x32xf32>
    %c0_13 = arith.constant 0 : index
    %c0_14 = arith.constant 0 : index
    %c0_15 = arith.constant 0 : index
    %9 = vector.load %arg8[%c0_13, %c0_14, %c0_15] : memref<1x1x1xf32, #tpu.memory_space<vmem>>, vector<1x1x1xf32>
    %10 = vector.shape_cast %9 : vector<1x1x1xf32> to vector<1x1xf32>
    %c0_16 = arith.constant 0 : index
    %c0_17 = arith.constant 0 : index
    %c0_18 = arith.constant 0 : index
    %11 = vector.load %arg3[%c0_16, %c0_17, %c0_18] : memref<1x128x64xf32, #tpu.memory_space<vmem>>, vector<1x128x64xf32>
    %12 = vector.shape_cast %11 : vector<1x128x64xf32> to vector<128x64xf32>
    %cst = arith.constant dense<0.000000e+00> : vector<8x64xf32>
    %13 = tpu.matmul %1, %12, %cst {dimension_numbers = #tpu.dot_dimension_numbers<[1], [0], [0], [1], [0, 0, 1, 1], [], []>} : vector<8x128xf32>, vector<128x64xf32>, vector<8x64xf32> -> vector<8x64xf32>
    %14 = vector.broadcast %4 : vector<1x64xf32> to vector<8x64xf32>
    %15 = arith.addf %13, %14 : vector<8x64xf32>
    %cst_19 = arith.constant 0.000000e+00 : f32
    %16 = vector.broadcast %cst_19 : f32 to vector<8x64xf32>
    %17 = arith.cmpf oge, %15, %16 : vector<8x64xf32>
    %cst_20 = arith.constant 2.000000e-01 : f32
    %18 = vector.broadcast %cst_20 : f32 to vector<8x64xf32>
    %19 = arith.mulf %18, %15 : vector<8x64xf32>
    %20 = arith.select %17, %15, %19 : vector<8x64xi1>, vector<8x64xf32>
    %c0_21 = arith.constant 0 : index
    %c0_22 = arith.constant 0 : index
    %c0_23 = arith.constant 0 : index
    %21 = vector.load %arg5[%c0_21, %c0_22, %c0_23] : memref<1x64x32xf32, #tpu.memory_space<vmem>>, vector<1x64x32xf32>
    %22 = vector.shape_cast %21 : vector<1x64x32xf32> to vector<64x32xf32>
    %cst_24 = arith.constant dense<0.000000e+00> : vector<8x32xf32>
    %23 = tpu.matmul %20, %22, %cst_24 {dimension_numbers = #tpu.dot_dimension_numbers<[1], [0], [0], [1], [0, 0, 1, 1], [], []>} : vector<8x64xf32>, vector<64x32xf32>, vector<8x32xf32> -> vector<8x32xf32>
    %24 = vector.broadcast %6 : vector<1x32xf32> to vector<8x32xf32>
    %25 = arith.addf %23, %24 : vector<8x32xf32>
    %cst_25 = arith.constant 0.000000e+00 : f32
    %26 = vector.broadcast %cst_25 : f32 to vector<8x32xf32>
    %27 = arith.cmpf oge, %25, %26 : vector<8x32xf32>
    %cst_26 = arith.constant 2.000000e-01 : f32
    %28 = vector.broadcast %cst_26 : f32 to vector<8x32xf32>
    %29 = arith.mulf %28, %25 : vector<8x32xf32>
    %30 = arith.select %27, %25, %29 : vector<8x32xi1>, vector<8x32xf32>
    %31 = vector.broadcast %8 : vector<1x32xf32> to vector<8x32xf32>
    %32 = arith.mulf %30, %31 : vector<8x32xf32>
    %cst_27 = arith.constant dense<0.000000e+00> : vector<8xf32>
    %33 = vector.multi_reduction <add>, %32, %cst_27 [1] : vector<8x32xf32> to vector<8xf32>
    %34 = vector.shape_cast %33 : vector<8xf32> to vector<8x1xf32>
    %35 = vector.broadcast %10 : vector<1x1xf32> to vector<8x1xf32>
    %36 = arith.addf %34, %35 : vector<8x1xf32>
    %37 = math.absf %36 : vector<8x1xf32>
    %cst_28 = arith.constant 0.000000e+00 : f32
    %38 = vector.broadcast %cst_28 : f32 to vector<8x1xf32>
    %39 = arith.subf %38, %37 : vector<8x1xf32>
    %40 = math.exp %39 : vector<8x1xf32>
    %cst_29 = arith.constant 1.000000e+00 : f32
    %41 = vector.broadcast %cst_29 : f32 to vector<8x1xf32>
    %42 = arith.addf %41, %40 : vector<8x1xf32>
    %43 = math.log %42 : vector<8x1xf32>
    %cst_30 = arith.constant 0.000000e+00 : f32
    %44 = vector.broadcast %cst_30 : f32 to vector<8x1xf32>
    %45 = arith.minimumf %36, %44 : vector<8x1xf32>
    %46 = arith.subf %45, %43 : vector<8x1xf32>
    %cst_31 = arith.constant -1.000000e+02 : f32
    %47 = vector.broadcast %cst_31 : f32 to vector<8x1xf32>
    %48 = arith.maximumf %46, %47 : vector<8x1xf32>
    %cst_32 = arith.constant 0.000000e+00 : f32
    %49 = vector.broadcast %cst_32 : f32 to vector<8x1xf32>
    %50 = arith.subf %49, %36 : vector<8x1xf32>
    %cst_33 = arith.constant 0.000000e+00 : f32
    %51 = vector.broadcast %cst_33 : f32 to vector<8x1xf32>
    %52 = arith.minimumf %50, %51 : vector<8x1xf32>
    %53 = arith.subf %52, %43 : vector<8x1xf32>
    %cst_34 = arith.constant -1.000000e+02 : f32
    %54 = vector.broadcast %cst_34 : f32 to vector<8x1xf32>
    %55 = arith.maximumf %53, %54 : vector<8x1xf32>
    %56 = arith.mulf %2, %48 : vector<8x1xf32>
    %cst_35 = arith.constant 1.000000e+00 : f32
    %57 = vector.broadcast %cst_35 : f32 to vector<8x1xf32>
    %58 = arith.subf %57, %2 : vector<8x1xf32>
    %59 = arith.mulf %58, %55 : vector<8x1xf32>
    %60 = arith.addf %56, %59 : vector<8x1xf32>
    %cst_36 = arith.constant 0.000000e+00 : f32
    %61 = vector.broadcast %cst_36 : f32 to vector<8x1xf32>
    %62 = arith.subf %61, %60 : vector<8x1xf32>
    %cst_37 = arith.constant dense<0.000000e+00> : vector<1xf32>
    %63 = vector.multi_reduction <add>, %62, %cst_37 [0] : vector<8x1xf32> to vector<1xf32>
    %64 = vector.shape_cast %63 : vector<1xf32> to vector<1x1xf32>
    %cst_38 = arith.constant 1.250000e-01 : f32
    %65 = vector.broadcast %cst_38 : f32 to vector<1x1xf32>
    %66 = arith.mulf %64, %65 : vector<1x1xf32>
    %c0_39 = arith.constant 0 : index
    %c0_40 = arith.constant 0 : index
    %c0_41 = arith.constant 0 : index
    %67 = vector.load %arg9[%c0_39, %c0_40, %c0_41] : memref<1x1x1xf32, #tpu.memory_space<vmem>>, vector<1x1x1xf32>
    %68 = vector.shape_cast %67 : vector<1x1x1xf32> to vector<1x1xf32>
    %69 = vector.shape_cast %66 : vector<1x1xf32> to vector<1x1x1xf32>
    tpu.vector_store %arg9[%c0_39, %c0_40, %c0_41], %69 {strides = array<i32>} : memref<1x1x1xf32, #tpu.memory_space<vmem>>, vector<1x1x1xf32>,
    return
  }
  func.func @transform_0(%arg0: i32) -> (i32, i32, i32) {
    %c0_i32 = arith.constant 0 : i32
    %c0_i32_0 = arith.constant 0 : i32
    %c0_i32_1 = arith.constant 0 : i32
    return %arg0, %c0_i32, %c0_i32_0 : i32, i32, i32
  }
  func.func @transform_1(%arg0: i32) -> (i32, i32) {
    %c0_i32 = arith.constant 0 : i32
    %c0_i32_0 = arith.constant 0 : i32
    %c0_i32_1 = arith.constant 0 : i32
    return %c0_i32, %c0_i32_0 : i32, i32
  }
  func.func @transform_2(%arg0: i32) -> (i32, i32, i32) {
    %c0_i32 = arith.constant 0 : i32
    %c0_i32_0 = arith.constant 0 : i32
    %c0_i32_1 = arith.constant 0 : i32
    return %arg0, %c0_i32, %c0_i32_0 : i32, i32, i32
  }
  func.func @transform_3(%arg0: i32) -> (i32, i32, i32) {
    %c0_i32 = arith.constant 0 : i32
    %c0_i32_0 = arith.constant 0 : i32
    %c0_i32_1 = arith.constant 0 : i32
    return %arg0, %c0_i32, %c0_i32_0 : i32, i32, i32
  }
  func.func @transform_4(%arg0: i32) -> (i32, i32, i32) {
    %c0_i32 = arith.constant 0 : i32
    %c0_i32_0 = arith.constant 0 : i32
    %c0_i32_1 = arith.constant 0 : i32
    return %arg0, %c0_i32, %c0_i32_0 : i32, i32, i32
  }
  func.func @transform_5(%arg0: i32) -> (i32, i32, i32) {
    %c0_i32 = arith.constant 0 : i32
    %c0_i32_0 = arith.constant 0 : i32
    %c0_i32_1 = arith.constant 0 : i32
    return %arg0, %c0_i32, %c0_i32_0 : i32, i32, i32
  }
  func.func @transform_6(%arg0: i32) -> (i32, i32, i32) {
    %c0_i32 = arith.constant 0 : i32
    %c0_i32_0 = arith.constant 0 : i32
    %c0_i32_1 = arith.constant 0 : i32
    return %arg0, %c0_i32, %c0_i32_0 : i32, i32, i32
  }
  func.func @transform_7(%arg0: i32) -> (i32, i32, i32) {
    %c0_i32 = arith.constant 0 : i32
    %c0_i32_0 = arith.constant 0 : i32
    %c0_i32_1 = arith.constant 0 : i32
    return %arg0, %c0_i32, %c0_i32_0 : i32, i32, i32
  }
  func.func @transform_8(%arg0: i32) -> (i32, i32, i32) {
    %c0_i32 = arith.constant 0 : i32
    %c0_i32_0 = arith.constant 0 : i32
    %c0_i32_1 = arith.constant 0 : i32
    return %arg0, %c0_i32, %c0_i32_0 : i32, i32, i32
  }
}

</mosaic_0001>

<bundles_post_ra>
// kernel: bmmf_binary_forward.1
= control target key start
LH: loop header
LB: loop body
LE: loop exit
PB: predicated region body
PF: predicated region fallthrough
CT: control target
= control target key end

     0   :  { %s948_s27 = smov 0   ;;  %s1036_s0 = inlined_call_operand.vmem [shape: f32[2,8,128], index: 0, kind: input, shape index: {}]   ;;  %s1037_s1 = inlined_call_operand.vmem [shape: f32[8,1], index: 1, kind: input, shape index: {}]   ;;  %s1038_s2 = inlined_call_operand.vmem [shape: f32[2,128,64], index: 2, kind: input, shape index: {}]   ;;  %s1039_s3 = inlined_call_operand.vmem [shape: f32[2,1,64], index: 3, kind: input, shape index: {}]   ;;  %s1040_s4 = inlined_call_operand.vmem [shape: f32[2,64,32], index: 4, kind: input, shape index: {}]   ;;  %s1041_s5 = inlined_call_operand.vmem [shape: f32[2,1,32], index: 5, kind: input, shape index: {}]   ;;  %s1042_s6 = inlined_call_operand.vmem [shape: f32[2,1,32], index: 6, kind: input, shape index: {}]   ;;  %s1043_s7 = inlined_call_operand.vmem [shape: f32[2,1,1], index: 7, kind: input, shape index: {}]   ;;  %s1044_s8 = inlined_call_operand.vmem [shape: f32[2,1,1], index: 8, kind: output, shape index: {}]  }
   0x1 LB: > { %s742_s28 = sadd.s32 4294967295, %s898_s27   ;;  %p746_p0 = scmp.ge.s32.totalorder %s898_s27, 1  ;;  %s898_s27 = sphi %s948_s27, %s18_s27  }
   0x2   : > { %p313_p1 = scmp.lt.s32.totalorder %s898_s27, 3 }
   0x4   : > { %p314_p2 = pnand %p746_p0, %p313_p1 }
   0x5   : > { %p366_p3 = scmp.lt.s32.totalorder (!%p314_p2), %s742_s28, 1  ;;  %v900_v0 = vmov (!%p314_p2), 0.0|0.0   ;;  %vm901_vm0 = vmmov (!%p314_p2), 0   ;;  %v902_v1 = vmov (!%p314_p2), 0.0   ;;  %vm510_vm2 = vcmask (!%p314_p2), 523264  }
   0x6   : > { %317 = sbr.rel (%p314_p2) target bundleno = 689 (0x2b1), region = 52  ;;  %841 = vmatprep.subr.bf16.mxu0 (!%p314_p2), %v900_v0  ;;  %819 = vmatprep.mubr.msk.f32.mxu0 (!%p314_p2), %vm901_vm0, %v902_v1  ;;  %vm594_vm4 = vcmask (!%p314_p2), 261120   ;;  %vm624_vm5 = vcmask (!%p314_p2), 7168   ;;  %vm633_vm6 = vcmask (!%p314_p2), 0  }
   0x7   : > { %865 = vmatprep.subr.bf16.mxu1 (!%p314_p2), %v900_v0  ;;  %838 = vmatprep.mubr.msk.f32.mxu1 (!%p314_p2), %vm901_vm0, %v902_v1 }
   0xd   : > { %s1046_s28 = smov (!%p366_p3, %s742_s28), 1 }
   0xe   : > { %s759_s29 = sshll.u32 %s1046_s28, 7  ;;  %s760_s11 = sshll.u32 %s1046_s28, 6 }
   0xf   : > { %s964_s10 = scalar_lea.vmem %s1038_s2, %s759_s29  ;;  %s974_s14 = scalar_lea.vmem %s1040_s4, %s760_s11 }
  0x10   : > { %v401_v2 = vld [vmem:[%s964_s10] sm:$0xff]  ;;  %v402_v3 = vld [vmem:[%s964_s10 + $0x8] sm:$0xff]  ;;  %v403_v4 = vld [vmem:[%s964_s10 + $0x10] sm:$0xff]  ;;  %s747_s15 = sshll.u32 %s1046_s28, 3  ;;  %s377_s21 = scalar_lea.vmem %s1039_s3, %s1046_s28 }
  0x11   : > { %v842_v5 = vpack.c.bf16 %v402_v3, %v401_v2  ;;  %v404_v6 = vld [vmem:[%s964_s10 + $0x18] sm:$0xff]  ;;  %v405_v8 = vld [vmem:[%s964_s10 + $0x20] sm:$0xff]  ;;  %v406_v9 = vld [vmem:[%s964_s10 + $0x28] sm:$0xff]  ;;  %s369_s18 = scalar_lea.vmem %s1036_s0, %s747_s15  ;;  %s385_s24 = scalar_lea.vmem %s1041_s5, %s1046_s28 }
  0x12   : > { %v845_v7 = vpack.c.bf16 %v404_v6, %v403_v4  ;;  %v496_v10 = vld [vmem:[%s974_s14] sm:$0xff]  ;;  %v497_v11 = vld [vmem:[%s974_s14 + $0x8] sm:$0xff]  ;;  %v498_v12 = vld [vmem:[%s974_s14 + $0x10] sm:$0xff]  ;;  %v848_v14 = vpack.c.bf16 %v406_v9, %v405_v8  ;;  %s388_s29 = scalar_lea.vmem %s1042_s6, %s1046_s28  ;;  %s394_s15 = scalar_lea.vmem %s1044_s8, %s1046_s28 }
  0x13   : > { %843 = vmatpush3.bf16.msra.mxu0 %v842_v5  ;;  %v499_v13 = vld [vmem:[%s974_s14 + $0x18] sm:$0xff]  ;;  %v866_v15 = vpack.c.bf16 %v497_v11, %v496_v10  ;;  %v407_v16 = vld [vmem:[%s964_s10 + $0x30] sm:$0xff]  ;;  %v500_v19 = vld [vmem:[%s974_s14 + $0x20] sm:$0xff] }
  0x14   : > { %844 = vmatprep.subr.bf16.mxu0 %v900_v0  ;;  %v408_v17 = vld [vmem:[%s964_s10 + $0x38] sm:$0xff]  ;;  %v869_v18 = vpack.c.bf16 %v499_v13, %v498_v12  ;;  %v501_v20 = vld [vmem:[%s974_s14 + $0x28] sm:$0xff]  ;;  %v409_v22 = vld [vmem:[%s964_s10 + $0x40] sm:$0xff] }
  0x15   : > { %867 = vmatpush3.bf16.msra.mxu1 %v866_v15  ;;  %v851_v21 = vpack.c.bf16 %v408_v17, %v407_v16  ;;  %v410_v23 = vld [vmem:[%s964_s10 + $0x48] sm:$0xff]  ;;  %v872_v24 = vpack.c.bf16 %v501_v20, %v500_v19  ;;  %v411_v26 = vld [vmem:[%s964_s10 + $0x50] sm:$0xff]  ;;  %v412_v27 = vld [vmem:[%s964_s10 + $0x58] sm:$0xff] }
  0x16   : > { %868 = vmatprep.subr.bf16.mxu1 %v900_v0  ;;  %v854_v25 = vpack.c.bf16 %v410_v23, %v409_v22  ;;  %v857_v28 = vpack.c.bf16 %v412_v27, %v411_v26  ;;  %v413_v29 = vld [vmem:[%s964_s10 + $0x60] sm:$0xff]  ;;  %v414_v30 = vld [vmem:[%s964_s10 + $0x68] sm:$0xff]  ;;  %v415_v32 = vld [vmem:[%s964_s10 + $0x70] sm:$0xff] }
  0x17   : > { %846 = vmatpush3.bf16.msra.mxu0 %v845_v7  ;;  %v860_v31 = vpack.c.bf16 %v414_v30, %v413_v29  ;;  %v416_v33 = vld [vmem:[%s964_s10 + $0x78] sm:$0xff]  ;;  %v395_v35 = vld [vmem:[%s369_s18] sm:$0xff]  ;;  %v502_v36 = vld [vmem:[%s974_s14 + $0x30] sm:$0xff]  ;;  %s391_s10 = scalar_lea.vmem %s1043_s7, %s1046_s28 }
  0x18   : > { %847 = vmatprep.subr.bf16.mxu0 %v900_v0  ;;  %v863_v34 = vpack.c.bf16 %v416_v33, %v415_v32  ;;  %v503_v37 = vld [vmem:[%s974_s14 + $0x38] sm:$0xff]  ;;  %v752_v39 = vld [vmem:[%s377_s21] ss:$0 sm:$0xff] }
  0x19   : > { %870 = vmatpush3.bf16.msra.mxu1 %v869_v18  ;;  %v875_v38 = vpack.c.bf16 %v503_v37, %v502_v36  ;;  %v753_v45 = vld [vmem:[%s385_s24] ss:$0 sm:$0xff] }
  0x1a   : > { %871 = vmatprep.subr.bf16.mxu1 %v900_v0  ;;  %v755_v50 = vld [vmem:[%s388_s29] ss:$0 sm:$0xff] }
  0x1b   : > { %849 = vmatpush3.bf16.msra.mxu0 %v848_v14  ;;  %v756_v54 = vld [vmem:[%s391_s10] ss:$0 sm:$0xff] }
  0x1c   : > { %850 = vmatprep.subr.bf16.mxu0 %v900_v0 }
  0x1d   : > { %873 = vmatpush3.bf16.msra.mxu1 %v872_v24 }
  0x1e   : > { %874 = vmatprep.subr.bf16.mxu1 %v900_v0 }
  0x1f   : > { %852 = vmatpush3.bf16.msra.mxu0 %v851_v21 }
  0x20   : > { %853 = vmatprep.subr.bf16.mxu0 %v900_v0 }
  0x21   : > { %876 = vmatpush3.bf16.msra.mxu1 %v875_v38 }
  0x23   : > { %855 = vmatpush3.bf16.msra.mxu0 %v854_v25 }
  0x24   : > { %856 = vmatprep.subr.bf16.mxu0 %v900_v0 }
  0x27   : > { %858 = vmatpush3.bf16.msra.mxu0 %v857_v28 }
  0x28   : > { %859 = vmatprep.subr.bf16.mxu0 %v900_v0 }
  0x2b   : > { %861 = vmatpush3.bf16.msra.mxu0 %v860_v31 }
  0x2c   : > { %862 = vmatprep.subr.bf16.mxu0 %v900_v0  ;;  %v396_v0 = vld [vmem:[%s1037_s1] sm:$0xff] }
  0x2d   : > { %v620_v6 = vsub.f32 1.0, %v396_v0 }
  0x2f   : > { %864 = vmatpush3.bf16.msra.mxu0 %v863_v34 }
  0x32   : > { %820 = vmatmul.mubr.f32.vlgmr.msra.gmra.mrb[0].mxu0 %v395_v35 }
 0x105   : > { %v489_v40 = vpop.f32.mrb[0].mxu0 }
 0x106   : > { %v490_v41 = vadd.f32 %v752_v39, %v489_v40  ;;  %v821_v42 = vpop.f32.mrb[1].mxu0 }
 0x108   : > { %vm493_vm1 = vcmp.ge.f32.partialorder %v490_v41, 0.0  ;;  %v494_v43 = vmul.f32 0.2, %v490_v41 }
 0x10a   : > { %v495_v44 = vsel %vm493_vm1, %v490_v41, %v494_v43 }
 0x10b   : > { %839 = vmatmul.mubr.msk.f32.vlgmr.msra.gmra.mrb[0].mxu1 %vm510_vm2, %v495_v44 }
 0x1de   : > { %v580_v46 = vpop.f32.mrb[0].mxu1 }
 0x1df   : > { %v581_v47 = vadd.f32 %v753_v45, %v580_v46  ;;  %v840_v48 = vpop.f32.mrb[1].mxu1 }
 0x1e1   : > { %v585_v49 = vmul.f32 0.2, %v581_v47  ;;  %vm584_vm3 = vcmp.ge.f32.partialorder %v581_v47, 0.0 }
 0x1e3   : > { %v586_v51 = vsel %vm584_vm3, %v581_v47, %v585_v49 }
 0x1e4   : > { %v593_v52 = vmul.f32 %v755_v50, %v586_v51 }
 0x1e6   : > { %v595_v53 = vsel %vm594_vm4, %v593_v52, 0.0 }
 0x1e7   : > { %596 = vadd.xlane.f32.xlu0 %v595_v53 }
 0x274   : > { %v597_v55 = vpop.xlane.xlu0 %596 }
 0x275   : > { %v604_v56 = vadd.f32 %v756_v54, %v597_v55 }
 0x277   : > { %v605_v57 = vand.u32 2147483647, %v604_v56  ;;  %v615_v62 = vsub.f32 0.0, %v604_v56  ;;  %v612_v2 = vmin.f32 %v604_v56, 0.0 }
 0x279   : > { %v606_v58 = vsub.f32 0.0, %v605_v57  ;;  %v616_v3 = vmin.f32 %v615_v62, 0.0 }
 0x27b   : > { %v607_v59 = vmul.f32 1.442695, %v606_v58 }
 0x27d   : > { %888 = vpow2.f32 %v607_v59 }
 0x287   : > { %v889_v60 = vpop.eup %888 }
 0x288   : > { %v609_v61 = vadd.f32 1.0, %v889_v60 }
 0x28a   : > { %890 = vlog2.f32 %v609_v61 }
 0x294   : > { %v891_v63 = vpop.eup %890 }
 0x295   : > { %v611_v1 = vmul.f32 0.6931472, %v891_v63 }
 0x297   : > { %v613_v4 = vsub.f32 %v612_v2, %v611_v1  ;;  %v617_v5 = vsub.f32 %v616_v3, %v611_v1 }
 0x299   : > { %v614_v7 = vmax.f32 %v613_v4, -100.0  ;;  %v618_v8 = vmax.f32 %v617_v5, -100.0 }
 0x29b   : > { %v619_v9 = vmul.f32 %v614_v7, %v396_v0  ;;  %v621_v10 = vmul.f32 %v620_v6, %v618_v8 }
 0x29d   : > { %v622_v11 = vadd.f32 %v621_v10, %v619_v9 }
 0x29f   : > { %v623_v12 = vsub.f32 0.0, %v622_v11 }
 0x2a1   : > { %v625_v13 = vsel %vm624_vm5, %v623_v12, 0.0 }
 0x2a2   : > { %v626_v14 = vrot.slane %v625_v13, 4 }
 0x2a4   : > { %v627_v15 = vadd.f32 %v626_v14, %v625_v13 }
 0x2a6   : > { %v628_v16 = vrot.slane %v627_v15, 2 }
 0x2a8   : > { %v629_v17 = vadd.f32 %v628_v16, %v627_v15 }
 0x2aa   : > { %v630_v18 = vrot.slane %v629_v17, 1 }
 0x2ac   : > { %v631_v19 = vadd.f32 %v630_v18, %v629_v17 }
 0x2ae   : > { %v632_v20 = vmul.f32 0.125, %v631_v19 }
 0x2b0   : > { %634 = vst.msk [vmem:[%s394_s15] sm:$0x1] %vm633_vm6, %v632_v20 }
 0x2b1 PF: > { %s18_s27 = sadd.s32 1, %s898_s27  }
 0x2b2   : > { %p15_p4 = scmp.ge.s32.totalorder %s18_s27, 4  }
 0x2b4   :  { %17 = sbr.rel (!%p15_p4) target bundleno = 1 (0x1), region = 100 }

</bundles_post_ra>
